<compile_context>
chip_gen: v5e
topology: v5e:2x2
jax: 0.10.0
libtpu: 0.0.40
codegen_flags: <defaults>
</compile_context>

<pallas_src>
import functools

import numpy as np
import jax
import jax.numpy as jnp
from jax.experimental import pallas as pl
from jax.experimental.pallas import tpu as pltpu

LANE = 128  # batch-tile granularity (lane axis)


def _round_up(n: int, m: int) -> int:
    return (n + m - 1) // m * m


def _cdiv(a: int, b: int) -> int:
    return -(-a // b)


# --------------------------------------------------------------------------- #
# Kernel (transposed / batch-on-lanes layout)
# --------------------------------------------------------------------------- #
def _critic_kernel(x_ref, wg_ref, wfc_ref, b_ref, o_ref, *, Wf):
    """All activations are (features, TB): features on sublanes, batch on lanes.

    wg_ref : (3*Wf, S)   LSTM input weights, gate rows packed [i | g | o]
    wfc_ref: (2*Wf+8,Wf) fc1 (rows 0:Wf), fc2 (rows Wf:2Wf), fc3 (row 2Wf)
    b_ref  : (5*Wf+8, 1) bias column: [b_i | b_g | b_o | b1 | b2 | b3]
    Zero padding rows/lanes propagate exact zeros through tanh/sigmoid*0, so
    no masking is ever needed.
    """
    f32 = jnp.float32
    x = x_ref[...]                                            # (S, TB)

    # --- LSTM, one step, h0 = c0 = 0: one fused gate matmul -------------------
    gates = jnp.dot(wg_ref[...], x, preferred_element_type=f32) + b_ref[0:3 * Wf, :]
    i_g = jax.nn.sigmoid(gates[0 * Wf:1 * Wf, :])             # input gate
    g_g = jnp.tanh(gates[1 * Wf:2 * Wf, :])                   # candidate gate
    o_g = jax.nn.sigmoid(gates[2 * Wf:3 * Wf, :])             # output gate
    h1 = o_g * jnp.tanh(i_g * g_g)                            # (Wf, TB); rows >= H are 0

    # --- MLP head --------------------------------------------------------------
    v = jnp.tanh(jnp.dot(wfc_ref[0:Wf, :], h1, preferred_element_type=f32)
                 + b_ref[3 * Wf:4 * Wf, :])
    v = jnp.tanh(jnp.dot(wfc_ref[Wf:2 * Wf, :], v, preferred_element_type=f32)
                 + b_ref[4 * Wf:5 * Wf, :])
    out = (jnp.dot(wfc_ref[2 * Wf:2 * Wf + 8, :], v, preferred_element_type=f32)
           + b_ref[5 * Wf:5 * Wf + 8, :])                     # (8, TB); row 0 is real
    o_ref[...] = out[0:1, :]                                  # (1, TB) lane-dense store


# --------------------------------------------------------------------------- #
# Wrapper
# --------------------------------------------------------------------------- #
def _batch_tiling(B, tile_b, min_steps=2):
    """Pick a lane-aligned batch tile; prefer >=2 grid steps (v7x megacore)."""
    B = max(B, 1)
    bp128 = _round_up(B, LANE)
    steps = _cdiv(bp128, min(_round_up(tile_b, LANE), bp128))
    if steps < min_steps and bp128 // LANE >= min_steps:
        steps = min_steps                     # give the 2nd TensorCore work (v7x)
    tb = _round_up(_cdiv(bp128, steps), LANE)
    return tb, tb * steps


def critic_forward(state, weights, *, dims, tile_b=1024):
    """state: (B, state_n) f32.  weights: (wg, wfc, bias) from pack_params.

    Returns the critic value, shape (B, 1).  Valid only for the module's
    single-step LSTM with zero initial state (see module docstring).
    """
    state_n, H, F1, F2 = dims
    Wf = _round_up(max(H, F1, F2), 8)
    wg, wfc, bias = weights
    assert wg.shape == (3 * Wf, state_n), wg.shape
    assert wfc.shape == (2 * Wf + 8, Wf), wfc.shape
    assert bias.shape == (5 * Wf + 8, 1), bias.shape

    B = state.shape[0]
    tb, Bp = _batch_tiling(B, tile_b)

    # Batch-on-lanes: kernel consumes (state_n, Bp).  This transpose/pad is one
    # tiny XLA pass over the (B, state_n) stream; callers that can hand in the
    # state already as (state_n, B) avoid it entirely.
    # TODO(synk): accept pre-transposed state to skip this extra HBM pass.
    x_t = jnp.transpose(state.astype(jnp.float32))            # (S, B)
    if Bp != B:
        x_t = jnp.pad(x_t, ((0, 0), (0, Bp - B)))

    kernel = functools.partial(_critic_kernel, Wf=Wf)
    out = pl.pallas_call(
        kernel,
        out_shape=jax.ShapeDtypeStruct((1, Bp), jnp.float32),
        grid=(Bp // tb,),
        in_specs=[
            pl.BlockSpec((state_n, tb), lambda i: (0, i)),        # activation stream
            pl.BlockSpec((3 * Wf, state_n), lambda i: (0, 0)),    # gate weights (resident)
            pl.BlockSpec((2 * Wf + 8, Wf), lambda i: (0, 0)),     # fc weights (resident)
            pl.BlockSpec((5 * Wf + 8, 1), lambda i: (0, 0)),      # bias column (resident)
        ],
        out_specs=pl.BlockSpec((1, tb), lambda i: (0, i)),        # 4 B per batch element
        compiler_params=pltpu.CompilerParams(
            dimension_semantics=("parallel",)),   # shard batch tiles over TCs (v7x)
    )(x_t, wg, wfc, bias)
    return out[0, :B].reshape(B, 1)


# --------------------------------------------------------------------------- #
# Parameters (torch layout: (out_features, in_features)) + packing
# --------------------------------------------------------------------------- #
def init_params(key, state_n, H, F1, F2):
    """Mirror the torch module's init: LSTM uniform(-1/sqrt(H), 1/sqrt(H)),
    fc layers orthogonal(gain=sqrt(2)) with zero bias (layerInit).
    Weights kept in torch (out_features, in_features) layout."""
    ks = jax.random.split(key, 6)
    k = 1.0 / np.sqrt(H)
    orth = jax.nn.initializers.orthogonal(scale=np.sqrt(2.0))
    # W_hh is omitted: it multiplies h0 == 0 and never reaches the output.
    return {
        "w_ih": jax.random.uniform(ks[0], (4 * H, state_n), jnp.float32, -k, k),
        "b_ih": jax.random.uniform(ks[1], (4 * H,), jnp.float32, -k, k),
        "b_hh": jax.random.uniform(ks[2], (4 * H,), jnp.float32, -k, k),
        "w1": orth(ks[3], (F1, H), jnp.float32),
        "b1": jnp.zeros((F1,), jnp.float32),
        "w2": orth(ks[4], (F2, F1), jnp.float32),
        "b2": jnp.zeros((F2,), jnp.float32),
        "w3": orth(ks[5], (1, F2), jnp.float32),
        "b3": jnp.zeros((1,), jnp.float32),
    }


def pack_params(params, state_n, H, F1, F2):
    """Pack parameters for the transposed (batch-on-lanes) kernel.

    Forget-gate rows are dropped (f * c0 == 0 because h0 = c0 = 0 — single-step
    zero-state use only).  All pad rows/lanes are exactly 0.0; keep that
    invariant if the packing is ever changed.
    """
    Wf = _round_up(max(H, F1, F2), 8)
    w_ih = np.asarray(params["w_ih"], np.float32)              # (4H, S) rows [i|f|g|o]
    b_g = (np.asarray(params["b_ih"], np.float32)
           + np.asarray(params["b_hh"], np.float32)).reshape(-1)

    wg = np.zeros((3 * Wf, state_n), np.float32)
    wg[0 * Wf:0 * Wf + H] = w_ih[0 * H:1 * H]                  # input gate
    wg[1 * Wf:1 * Wf + H] = w_ih[2 * H:3 * H]                  # candidate gate
    wg[2 * Wf:2 * Wf + H] = w_ih[3 * H:4 * H]                  # output gate

    wfc = np.zeros((2 * Wf + 8, Wf), np.float32)
    wfc[0:F1, 0:H] = np.asarray(params["w1"], np.float32)
    wfc[Wf:Wf + F2, 0:F1] = np.asarray(params["w2"], np.float32)
    wfc[2 * Wf, 0:F2] = np.asarray(params["w3"], np.float32).reshape(-1)

    b = np.zeros((5 * Wf + 8, 1), np.float32)
    b[0 * Wf:0 * Wf + H, 0] = b_g[0 * H:1 * H]
    b[1 * Wf:1 * Wf + H, 0] = b_g[2 * H:3 * H]
    b[2 * Wf:2 * Wf + H, 0] = b_g[3 * H:4 * H]
    b[3 * Wf:3 * Wf + F1, 0] = np.asarray(params["b1"], np.float32)
    b[4 * Wf:4 * Wf + F2, 0] = np.asarray(params["b2"], np.float32)
    b[5 * Wf, 0] = float(np.asarray(params["b3"]).reshape(-1)[0])
    # TODO(synk): on v6e/v7x the weight slabs could be stored in bf16 (half the
    # DMA bytes, native MXU path); kept f32 for exact parity with the f32 check.
    return jnp.asarray(wg), jnp.asarray(wfc), jnp.asarray(b)


# --------------------------------------------------------------------------- #
# Pure-JAX reference (mirrors the torch forward, including the forget gate)
# --------------------------------------------------------------------------- #
def critic_reference(state, params):
    H = params["w_ih"].shape[0] // 4
    gates = state @ params["w_ih"].T + params["b_ih"] + params["b_hh"]
    i_g = jax.nn.sigmoid(gates[:, 0 * H:1 * H])
    f_g = jax.nn.sigmoid(gates[:, 1 * H:2 * H])
    g_g = jnp.tanh(gates[:, 2 * H:3 * H])
    o_g = jax.nn.sigmoid(gates[:, 3 * H:4 * H])
    c0 = jnp.zeros_like(i_g)
    c1 = f_g * c0 + i_g * g_g
    h1 = o_g * jnp.tanh(c1)
    v = jnp.tanh(h1 @ params["w1"].T + params["b1"])
    v = jnp.tanh(v @ params["w2"].T + params["b2"])            # .squeeze(-1) is a no-op
    return v @ params["w3"].T + params["b3"]


if __name__ == "__main__":
    # Small shapes implied by the module: state_n=16, lstmHiddenSize=32,
    # fc1_n=32, fc2_n=32, batch=2.
    B, state_n, lstm_hidden, fc1_n, fc2_n = 2, 16, 32, 32, 32

    key = jax.random.PRNGKey(0)
    k_x, k_p = jax.random.split(key)
    state = jax.random.normal(k_x, (B, state_n), jnp.float32)
    params = init_params(k_p, state_n, lstm_hidden, fc1_n, fc2_n)
    weights = pack_params(params, state_n, lstm_hidden, fc1_n, fc2_n)

    critic = jax.jit(functools.partial(
        critic_forward, dims=(state_n, lstm_hidden, fc1_n, fc2_n)))
    out = jax.block_until_ready(critic(state, weights))

    ref = critic_reference(state, params)
    assert out.shape == (B, 1), out.shape
    assert jnp.allclose(out, ref, atol=1e-5, rtol=1e-5), (out, ref)

    print("KERNEL_OK")
</pallas_src>

<mosaic_0001>
module attributes {stable_mosaic.version = 11 : i64} {
  func.func @_critic_kernel(%arg0: i32, %arg1: memref<16x128xf32, #tpu.memory_space<vmem>>, %arg2: memref<96x16xf32, #tpu.memory_space<vmem>>, %arg3: memref<72x32xf32, #tpu.memory_space<vmem>>, %arg4: memref<168x1xf32, #tpu.memory_space<vmem>>, %arg5: memref<1x128xf32, #tpu.memory_space<vmem>>) attributes {dimension_semantics = [#tpu.dimension_semantics<parallel>], iteration_bounds = array<i64: 1>, scalar_prefetch = 0 : i64, scratch_operands = 0 : i64, tpu.core_type = #tpu.core_type<tc>, window_params = [{transform_indices = @transform_0, window_bounds = array<i64: 16, 128>}, {pipeline_mode = #tpu.pipeline_mode<synchronous>, transform_indices = @transform_1, window_bounds = array<i64: 96, 16>}, {pipeline_mode = #tpu.pipeline_mode<synchronous>, transform_indices = @transform_2, window_bounds = array<i64: 72, 32>}, {pipeline_mode = #tpu.pipeline_mode<synchronous>, transform_indices = @transform_3, window_bounds = array<i64: 168, 1>}, {transform_indices = @transform_4, window_bounds = array<i64: 1, 128>}]} {
    %c0 = arith.constant 0 : index
    %c0_0 = arith.constant 0 : index
    %0 = vector.load %arg1[%c0, %c0_0] : memref<16x128xf32, #tpu.memory_space<vmem>>, vector<16x128xf32>
    %c0_1 = arith.constant 0 : index
    %c0_2 = arith.constant 0 : index
    %1 = vector.load %arg2[%c0_1, %c0_2] : memref<96x16xf32, #tpu.memory_space<vmem>>, vector<96x16xf32>
    %cst = arith.constant dense<0.000000e+00> : vector<96x128xf32>
    %2 = tpu.matmul %1, %0, %cst {dimension_numbers = #tpu.dot_dimension_numbers<[1], [0], [0], [1], [0, 0, 1, 1], [], []>} : vector<96x16xf32>, vector<16x128xf32>, vector<96x128xf32> -> vector<96x128xf32>
    %c0_3 = arith.constant 0 : index
    %c0_4 = arith.constant 0 : index
    %3 = vector.load %arg4[%c0_3, %c0_4] : memref<168x1xf32, #tpu.memory_space<vmem>>, vector<96x1xf32>
    %4 = vector.broadcast %3 : vector<96x1xf32> to vector<96x128xf32>
    %5 = arith.addf %2, %4 : vector<96x128xf32>
    %6 = vector.extract_strided_slice %5 {offsets = [0, 0], sizes = [32, 128], strides = [1, 1]} : vector<96x128xf32> to vector<32x128xf32>
    %7 = arith.negf %6 : vector<32x128xf32>
    %8 = math.exp %7 : vector<32x128xf32>
    %cst_5 = arith.constant 1.000000e+00 : f32
    %9 = vector.broadcast %cst_5 : f32 to vector<32x128xf32>
    %10 = arith.addf %9, %8 : vector<32x128xf32>
    %11 = arith.divf %9, %10 : vector<32x128xf32>
    %12 = vector.extract_strided_slice %5 {offsets = [32, 0], sizes = [32, 128], strides = [1, 1]} : vector<96x128xf32> to vector<32x128xf32>
    %13 = math.tanh %12 : vector<32x128xf32>
    %14 = vector.extract_strided_slice %5 {offsets = [64, 0], sizes = [32, 128], strides = [1, 1]} : vector<96x128xf32> to vector<32x128xf32>
    %15 = arith.negf %14 : vector<32x128xf32>
    %16 = math.exp %15 : vector<32x128xf32>
    %cst_6 = arith.constant 1.000000e+00 : f32
    %17 = vector.broadcast %cst_6 : f32 to vector<32x128xf32>
    %18 = arith.addf %17, %16 : vector<32x128xf32>
    %19 = arith.divf %17, %18 : vector<32x128xf32>
    %20 = arith.mulf %11, %13 : vector<32x128xf32>
    %21 = math.tanh %20 : vector<32x128xf32>
    %22 = arith.mulf %19, %21 : vector<32x128xf32>
    %c0_7 = arith.constant 0 : index
    %c0_8 = arith.constant 0 : index
    %23 = vector.load %arg3[%c0_7, %c0_8] : memref<72x32xf32, #tpu.memory_space<vmem>>, vector<32x32xf32>
    %cst_9 = arith.constant dense<0.000000e+00> : vector<32x128xf32>
    %24 = tpu.matmul %23, %22, %cst_9 {dimension_numbers = #tpu.dot_dimension_numbers<[1], [0], [0], [1], [0, 0, 1, 1], [], []>} : vector<32x32xf32>, vector<32x128xf32>, vector<32x128xf32> -> vector<32x128xf32>
    %c96 = arith.constant 96 : index
    %c0_10 = arith.constant 0 : index
    %25 = vector.load %arg4[%c96, %c0_10] : memref<168x1xf32, #tpu.memory_space<vmem>>, vector<32x1xf32>
    %26 = vector.broadcast %25 : vector<32x1xf32> to vector<32x128xf32>
    %27 = arith.addf %24, %26 : vector<32x128xf32>
    %28 = math.tanh %27 : vector<32x128xf32>
    %c32 = arith.constant 32 : index
    %c0_11 = arith.constant 0 : index
    %29 = vector.load %arg3[%c32, %c0_11] : memref<72x32xf32, #tpu.memory_space<vmem>>, vector<32x32xf32>
    %cst_12 = arith.constant dense<0.000000e+00> : vector<32x128xf32>
    %30 = tpu.matmul %29, %28, %cst_12 {dimension_numbers = #tpu.dot_dimension_numbers<[1], [0], [0], [1], [0, 0, 1, 1], [], []>} : vector<32x32xf32>, vector<32x128xf32>, vector<32x128xf32> -> vector<32x128xf32>
    %c128 = arith.constant 128 : index
    %c0_13 = arith.constant 0 : index
    %31 = vector.load %arg4[%c128, %c0_13] : memref<168x1xf32, #tpu.memory_space<vmem>>, vector<32x1xf32>
    %32 = vector.broadcast %31 : vector<32x1xf32> to vector<32x128xf32>
    %33 = arith.addf %30, %32 : vector<32x128xf32>
    %34 = math.tanh %33 : vector<32x128xf32>
    %c64 = arith.constant 64 : index
    %c0_14 = arith.constant 0 : index
    %35 = vector.load %arg3[%c64, %c0_14] : memref<72x32xf32, #tpu.memory_space<vmem>>, vector<8x32xf32>
    %cst_15 = arith.constant dense<0.000000e+00> : vector<8x128xf32>
    %36 = tpu.matmul %35, %34, %cst_15 {dimension_numbers = #tpu.dot_dimension_numbers<[1], [0], [0], [1], [0, 0, 1, 1], [], []>} : vector<8x32xf32>, vector<32x128xf32>, vector<8x128xf32> -> vector<8x128xf32>
    %c160 = arith.constant 160 : index
    %c0_16 = arith.constant 0 : index
    %37 = vector.load %arg4[%c160, %c0_16] : memref<168x1xf32, #tpu.memory_space<vmem>>, vector<8x1xf32>
    %38 = vector.broadcast %37 : vector<8x1xf32> to vector<8x128xf32>
    %39 = arith.addf %36, %38 : vector<8x128xf32>
    %40 = vector.extract_strided_slice %39 {offsets = [0, 0], sizes = [1, 128], strides = [1, 1]} : vector<8x128xf32> to vector<1x128xf32>
    %c0_17 = arith.constant 0 : index
    %c0_18 = arith.constant 0 : index
    %41 = vector.load %arg5[%c0_17, %c0_18] : memref<1x128xf32, #tpu.memory_space<vmem>>, vector<1x128xf32>
    tpu.vector_store %arg5[%c0_17, %c0_18], %40 {strides = array<i32>} : memref<1x128xf32, #tpu.memory_space<vmem>>, vector<1x128xf32>,
    return
  }
  func.func @transform_0(%arg0: i32) -> (i32, i32) {
    %c0_i32 = arith.constant 0 : i32
    %c0_i32_0 = arith.constant 0 : i32
    return %c0_i32, %arg0 : i32, i32
  }
  func.func @transform_1(%arg0: i32) -> (i32, i32) {
    %c0_i32 = arith.constant 0 : i32
    %c0_i32_0 = arith.constant 0 : i32
    %c0_i32_1 = arith.constant 0 : i32
    return %c0_i32, %c0_i32_0 : i32, i32
  }
  func.func @transform_2(%arg0: i32) -> (i32, i32) {
    %c0_i32 = arith.constant 0 : i32
    %c0_i32_0 = arith.constant 0 : i32
    %c0_i32_1 = arith.constant 0 : i32
    return %c0_i32, %c0_i32_0 : i32, i32
  }
  func.func @transform_3(%arg0: i32) -> (i32, i32) {
    %c0_i32 = arith.constant 0 : i32
    %c0_i32_0 = arith.constant 0 : i32
    %c0_i32_1 = arith.constant 0 : i32
    return %c0_i32, %c0_i32_0 : i32, i32
  }
  func.func @transform_4(%arg0: i32) -> (i32, i32) {
    %c0_i32 = arith.constant 0 : i32
    %c0_i32_0 = arith.constant 0 : i32
    return %c0_i32, %arg0 : i32, i32
  }
}

</mosaic_0001>

<bundles_post_ra>
// kernel: critic_forward.1
= control target key start
LH: loop header
LB: loop body
LE: loop exit
PB: predicated region body
PF: predicated region fallthrough
CT: control target
= control target key end

     0   :  { %v644_v0 = vmov 0   ;;  %vm103_vm0 = vcmask 130048   ;;  %s978_s3 = inlined_call_operand.vmem [shape: f32[168,1], index: 3, kind: input, shape index: {}]   ;;  %s979_s0 = inlined_call_operand.vmem [shape: f32[16,128], index: 0, kind: input, shape index: {}]   ;;  %s980_s1 = inlined_call_operand.vmem [shape: f32[96,16], index: 1, kind: input, shape index: {}]   ;;  %s981_s2 = inlined_call_operand.vmem [shape: f32[72,32], index: 2, kind: input, shape index: {}]   ;;  %s982_s4 = inlined_call_operand.vmem [shape: f32[1,128], index: 4, kind: output, shape index: {}]  }
   0x1   :  { %578 = vset.pattern.permute.xlu1 %v644_v0  ;;  %577 = vset.pattern.permute.xlu0 %v644_v0  ;;  %v34_v1 = vld [vmem:[%s978_s3 + $0x18] sm:$0xff]  ;;  %v32_v2 = vld [vmem:[%s978_s3 + $0x8] sm:$0xff]  ;;  %v17_v4 = vld [vmem:[%s979_s0] sm:$0xff] }
   0x2   :  { %v18_v3 = vld [vmem:[%s979_s0 + $0x8] sm:$0xff]  ;;  %60 = vperm.xlu0 %577, %v34_v1   ;;  %50 = vperm.xlu1 %578, %v32_v2   ;;  %v19_v5 = vld [vmem:[%s980_s1] sm:$0xff]  ;;  %v26_v6 = vld [vmem:[%s980_s1 + $0x38] sm:$0xff] }
   0x3   :  { %154 = vmatpush.msra.mxu0 %v18_v3  ;;  %573 = vmatpush.msra.mxu3 %v18_v3  ;;  %v42_v7 = vld [vmem:[%s978_s3 + $0x58] sm:$0xff]  ;;  %v25_v8 = vld [vmem:[%s980_s1 + $0x30] sm:$0xff]  ;;  %v31_v10 = vld [vmem:[%s978_s3] sm:$0xff] }
   0x4   :  { %579 = vset.pattern.permute.xlu2 %v644_v0  ;;  %572 = vmatpush.msra.mxu1 %v18_v3  ;;  %v33_v9 = vld [vmem:[%s978_s3 + $0x10] sm:$0xff]  ;;  %v20_v11 = vld [vmem:[%s980_s1 + $0x8] sm:$0xff]  ;;  %v27_v12 = vld [vmem:[%s980_s1 + $0x40] sm:$0xff] }
   0x5   :  { %155 = vmatpush.msra.mxu0 %v17_v4  ;;  %575 = vmatpush.msra.mxu3 %v17_v4  ;;  %v41_v13 = vld [vmem:[%s978_s3 + $0x50] sm:$0xff]  ;;  %v40_v14 = vld [vmem:[%s978_s3 + $0x48] sm:$0xff]  ;;  %v39_v15 = vld [vmem:[%s978_s3 + $0x40] sm:$0xff] }
   0x6   :  { %543 = vmatmul.msk.f32.vlgmr.msra.gmra.mxu0 %vm103_vm0, %v19_v5  ;;  %550 = vmatmul.msk.f32.vlgmr.msra.gmra.mxu3 %vm103_vm0, %v26_v6  ;;  %v21_v16 = vld [vmem:[%s980_s1 + $0x10] sm:$0xff]  ;;  %v28_v17 = vld [vmem:[%s980_s1 + $0x48] sm:$0xff]  ;;  %v38_v18 = vld [vmem:[%s978_s3 + $0x38] sm:$0xff] }
   0x7   :  { %100 = vperm.xlu2 %579, %v42_v7   ;;  %574 = vmatpush.msra.mxu1 %v17_v4  ;;  %v37_v19 = vld [vmem:[%s978_s3 + $0x30] sm:$0xff]  ;;  %v36_v20 = vld [vmem:[%s978_s3 + $0x28] sm:$0xff]  ;;  %v22_v21 = vld [vmem:[%s980_s1 + $0x18] sm:$0xff] }
   0x8   :  { %549 = vmatmul.msk.f32.vlgmr.msra.gmra.mxu1 %vm103_vm0, %v25_v8  ;;  %v29_v22 = vld [vmem:[%s980_s1 + $0x50] sm:$0xff]  ;;  %v35_v23 = vld [vmem:[%s978_s3 + $0x20] sm:$0xff]  ;;  %v368_v24 = vld [vmem:[%s978_s3 + $0x78] sm:$0xff] }
   0x9   :  { %v367_v25 = vld [vmem:[%s978_s3 + $0x70] sm:$0xff]  ;;  %v23_v26 = vld [vmem:[%s980_s1 + $0x20] sm:$0xff]  ;;  %v30_v27 = vld [vmem:[%s980_s1 + $0x58] sm:$0xff] }
   0xa   :  { %55 = vperm.xlu0 %577, %v33_v9   ;;  %45 = vperm.xlu1 %578, %v31_v10   ;;  %v366_v28 = vld [vmem:[%s978_s3 + $0x68] sm:$0xff]  ;;  %v365_v29 = vld [vmem:[%s978_s3 + $0x60] sm:$0xff]  ;;  %v442_v30 = vld [vmem:[%s978_s3 + $0x98] sm:$0xff] }
   0xb   :  { %v24_v31 = vld [vmem:[%s980_s1 + $0x28] sm:$0xff]  ;;  %v441_v32 = vld [vmem:[%s978_s3 + $0x90] sm:$0xff]  ;;  %v439_v34 = vld [vmem:[%s978_s3 + $0x80] sm:$0xff] }
   0xc   :  { %v440_v33 = vld [vmem:[%s978_s3 + $0x88] sm:$0xff]  ;;  %v509_v35 = vld [vmem:[%s978_s3 + $0xa0] sm:$0xff] }
   0xe   :  { %544 = vmatmul.msk.f32.gmra.mxu0 %vm103_vm0, %v20_v11  ;;  %551 = vmatmul.msk.f32.gmra.mxu3 %vm103_vm0, %v27_v12 }
   0xf   :  { %95 = vperm.xlu2 %579, %v41_v13  }
  0x12   :  { %90 = vperm.xlu0 %577, %v40_v14   ;;  %85 = vperm.xlu1 %578, %v39_v15  }
  0x16   :  { %545 = vmatmul.msk.f32.gmra.mxu0 %vm103_vm0, %v21_v16  ;;  %552 = vmatmul.msk.f32.gmra.mxu3 %vm103_vm0, %v28_v17 }
  0x17   :  { %80 = vperm.xlu2 %579, %v38_v18  }
  0x1a   :  { %75 = vperm.xlu0 %577, %v37_v19   ;;  %70 = vperm.xlu1 %578, %v36_v20  }
  0x1e   :  { %546 = vmatmul.msk.f32.gmra.mxu0 %vm103_vm0, %v22_v21  ;;  %553 = vmatmul.msk.f32.gmra.mxu3 %vm103_vm0, %v29_v22 }
  0x1f   :  { %65 = vperm.xlu2 %579, %v35_v23  }
  0x22   :  { %386 = vperm.xlu0 %577, %v368_v24   ;;  %381 = vperm.xlu1 %578, %v367_v25  }
  0x26   :  { %547 = vmatmul.msk.f32.gmra.mxu0 %vm103_vm0, %v23_v26  ;;  %554 = vmatmul.msk.f32.gmra.mxu3 %vm103_vm0, %v30_v27 }
  0x27   :  { %376 = vperm.xlu2 %579, %v366_v28  }
  0x2a   :  { %371 = vperm.xlu0 %577, %v365_v29   ;;  %460 = vperm.xlu1 %578, %v442_v30  }
  0x2e   :  { %548 = vmatmul.msk.f32.gmra.mxu0 %vm103_vm0, %v24_v31 }
  0x2f   :  { %455 = vperm.xlu2 %579, %v441_v32  }
  0x32   :  { %450 = vperm.xlu0 %577, %v440_v33   ;;  %445 = vperm.xlu1 %578, %v439_v34  }
  0x37   :  { %512 = vperm.xlu2 %579, %v509_v35  }
  0x61   :  { %v101_v46 = vpop.permute.xlu2 %100 }
  0x69   :  { %v96_v61 = vpop.permute.xlu2 %95 }
  0x71   :  { %v81_v12 = vpop.permute.xlu2 %80 }
  0x74   :  { %v51_v36 = vpop.permute.xlu1 %50  ;;  %v61_v38 = vpop.permute.xlu0 %60 }
  0x7c   :  { %v46_v39 = vpop.permute.xlu1 %45  ;;  %v56_v45 = vpop.permute.xlu0 %55 }
  0x83   :  { %v157_v37 = vpop.f32.mrf.mxu0 }
  0x84   :  { %v158_v40 = vadd.f32 %v157_v37, %v46_v39  ;;  %v86_v51 = vpop.permute.xlu1 %85  ;;  %v91_v56 = vpop.permute.xlu0 %90 }
  0x85   :  { %v175_v9 = vpop.f32.mrf.mxu1 }
  0x86   :  { %v555_v43 = vmul.f32 -1.442695, %v158_v40 }
  0x88   :  { %580 = vpow2.f32 %v555_v43 }
  0x89   :  { %v178_v41 = vpop.f32.mrf.mxu3 }
  0x8a   :  { %v179_v16 = vadd.f32 %v178_v41, %v81_v12 }
  0x8b   :  { %v160_v42 = vpop.f32.mrf.mxu0 }
  0x8c   :  { %v161_v44 = vadd.f32 %v160_v42, %v51_v36  ;;  %v76_v17 = vpop.permute.xlu0 %75  ;;  %v71_v43 = vpop.permute.xlu1 %70 }
  0x8d   :  { %v176_v19 = vadd.f32 %v175_v9, %v76_v17 }
  0x8e   :  { %v556_v47 = vmul.f32 -1.442695, %v161_v44  ;;  %v581_v52 = vpop.eup %580 }
  0x8f   :  { %v787_v55 = vadd.f32 1.0, %v581_v52 }
  0x90   :  { %582 = vpow2.f32 %v556_v47 }
  0x91   :  { %v181_v48 = vpop.f32.mrf.mxu3  ;;  %vm214_vm1 = vweird.f32 %v787_v55  ;;  %v218_v41 = vand.u32 2147483647, %v787_v55 }
  0x92   :  { %v182_v53 = vadd.f32 %v181_v48, %v86_v51 }
  0x93   :  { %v163_v49 = vpop.f32.mrf.mxu0  ;;  %vm219_vm15 = vcmp.eq.f32.partialorder %v218_v41, 8.507059e+37 }
  0x94   :  { %v164_v50 = vadd.f32 %v163_v49, %v56_v45  ;;  %v559_v58 = vmul.f32 -1.442695, %v182_v53  ;;  %v220_v45 = vand.u32 2147483648, %v787_v55 }
  0x96   :  { %v557_v54 = vmul.f32 -1.442695, %v164_v50  ;;  %v583_v60 = vpop.eup %582 }
  0x97   :  { %v790_v2 = vadd.f32 1.0, %v583_v60 }
  0x98   :  { %584 = vpow2.f32 %v557_v54 }
  0x99   :  { %v184_v57 = vpop.f32.mrf.mxu3  ;;  %586 = vrcp.f32 %v787_v55  ;;  %vm229_vm11 = vweird.f32 %v790_v2 }
  0x9a   :  { %v185_v59 = vadd.f32 %v184_v57, %v91_v56  ;;  %588 = vpow2.f32 %v559_v58 }
  0x9b   :  { %v166_v62 = vpop.f32.mrf.mxu0 }
  0x9c   :  { %v560_v63 = vmul.f32 -1.442695, %v185_v59  ;;  %v167_v0 = vadd.f32 %v166_v62, %v61_v38  ;;  %v66_v38 = vpop.permute.xlu2 %65 }
  0x9e   :  { %v585_v1 = vpop.eup %584  ;;  %v558_v3 = vmul.f32 -1.442695, %v167_v0  ;;  %590 = vpow2.f32 %v560_v63 }
  0x9f   :  { %v792_v4 = vadd.f32 1.0, %v585_v1  ;;  %v796_v7 = vpop.eup %586 }
  0xa0   :  { %592 = vpow2.f32 %v558_v3  ;;  %v589_v8 = vpop.eup %588  ;;  %v210_v15 = vmul.f32 %v796_v7, %v787_v55  ;;  %vm215_vm2 = vweird.f32 %v796_v7 }
  0xa1   :  { %594 = vrcp.f32 %v792_v4  ;;  %v187_v5 = vpop.f32.mrf.mxu3  ;;  %v806_v22 = vadd.f32 1.0, %v589_v8  ;;  %vm244_vm4 = vweird.f32 %v792_v4  ;;  %v248_v57 = vand.u32 2147483647, %v792_v4  ;;  %vm876_vm10 = vmor %vm214_vm1, %vm215_vm2 }
  0xa2   :  { %596 = vrcp.f32 %v790_v2  ;;  %v188_v6 = vadd.f32 %v187_v5, %v96_v61  ;;  %v211_v26 = vsub.f32 1.0, %v210_v15  ;;  %v250_v60 = vand.u32 2147483648, %v792_v4 }
  0xa3   :  { %v169_v13 = vpop.f32.mrf.mxu0  ;;  %vm249_vm13 = vcmp.eq.f32.partialorder %v248_v57, 8.507059e+37 }
  0xa4   :  { %v561_v10 = vmul.f32 -1.442695, %v188_v6  ;;  %v591_v11 = vpop.eup %590  ;;  %v212_v33 = vmul.f32 %v796_v7, %v211_v26  ;;  %v170_v44 = vadd.f32 %v169_v13, %v66_v38  ;;  %v251_v12 = vor.u32 1.1754944e-38, %v250_v60 }
  0xa5   :  { %v810_v24 = vadd.f32 1.0, %v591_v11  ;;  %v300_v60 = vand.u32 2147483648, %v806_v22 }
  0xa6   :  { %v593_v14 = vpop.eup %592  ;;  %598 = vpow2.f32 %v561_v10  ;;  %v213_v49 = vadd.f32 %v796_v7, %v212_v33 }
  0xa7   :  { %v800_v18 = vpop.eup %594  ;;  %v802_v20 = vadd.f32 1.0, %v593_v14  ;;  %v233_v14 = vand.u32 2147483647, %v790_v2 }
  0xa8   :  { %v804_v21 = vpop.eup %596  ;;  %v240_v23 = vmul.f32 %v800_v18, %v792_v4  ;;  %vm245_vm5 = vweird.f32 %v800_v18  ;;  %v217_v15 = vsel %vm876_vm10, %v796_v7, %v213_v49 }
  0xa9   :  { %600 = vrcp.f32 %v802_v20  ;;  %v190_v25 = vpop.f32.mrf.mxu3  ;;  %v225_v28 = vmul.f32 %v804_v21, %v790_v2  ;;  %vm230_vm3 = vweird.f32 %v804_v21  ;;  %v265_v53 = vand.u32 2147483648, %v802_v20  ;;  %vm850_vm7 = vmor %vm244_vm4, %vm245_vm5 }
  0xaa   :  { %602 = vtanh.f32 %v179_v16  ;;  %v191_v27 = vadd.f32 %v190_v25, %v101_v46  ;;  %v241_v30 = vsub.f32 1.0, %v240_v23  ;;  %v235_v46 = vand.u32 2147483648, %v790_v2  ;;  %vm887_vm14 = vmor %vm229_vm11, %vm230_vm3  ;;  %v387_v16 = vpop.permute.xlu0 %386 }
  0xab   :  { %604 = vtanh.f32 %v176_v19  ;;  %v226_v35 = vsub.f32 1.0, %v225_v28  ;;  %v172_v36 = vpop.f32.mrf.mxu0  ;;  %v263_v62 = vand.u32 2147483647, %v802_v20  ;;  %vm259_vm8 = vweird.f32 %v802_v20 }
  0xac   :  { %v599_v29 = vpop.eup %598  ;;  %606 = vrcp.f32 %v806_v22  ;;  %v562_v31 = vmul.f32 -1.442695, %v191_v27  ;;  %v242_v39 = vmul.f32 %v800_v18, %v241_v30  ;;  %v173_v50 = vadd.f32 %v172_v36, %v71_v43 }
  0xad   :  { %608 = vrcp.f32 %v810_v24  ;;  %v817_v32 = vadd.f32 1.0, %v599_v29  ;;  %v227_v52 = vmul.f32 %v804_v21, %v226_v35  ;;  %v266_v5 = vor.u32 1.1754944e-38, %v265_v53 }
  0xae   :  { %610 = vpow2.f32 %v562_v31  ;;  %v243_v56 = vadd.f32 %v800_v18, %v242_v39  ;;  %vm264_vm12 = vcmp.eq.f32.partialorder %v263_v62, 8.507059e+37  ;;  %v221_v19 = vor.u32 1.1754944e-38, %v220_v45 }
  0xaf   :  { %v601_v34 = vpop.eup %600  ;;  %612 = vrcp.f32 %v817_v32  ;;  %v228_v3 = vadd.f32 %v804_v21, %v227_v52  ;;  %v236_v25 = vor.u32 1.1754944e-38, %v235_v46  ;;  %vm234_vm0 = vcmp.eq.f32.partialorder %v233_v14, 8.507059e+37 }
  0xb0   :  { %v821_v37 = vpop.eup %602  ;;  %v255_v40 = vmul.f32 %v601_v34, %v802_v20  ;;  %vm260_vm6 = vweird.f32 %v601_v34  ;;  %614 = vtanh.f32 %v170_v44  ;;  %v247_v8 = vsel %vm850_vm7, %v800_v18, %v243_v56 }
  0xb1   :  { %v827_v42 = vpop.eup %604  ;;  %616 = vtanh.f32 %v173_v50  ;;  %vm859_vm9 = vmor %vm259_vm8, %vm260_vm6  ;;  %v252_v18 = vsel %vm249_vm13, %v251_v12, %v247_v8  ;;  %v232_v2 = vsel %vm887_vm14, %v804_v21, %v228_v3  ;;  %v222_v28 = vsel %vm219_vm15, %v221_v19, %v217_v15  ;;  %v364_v12 = vld [vmem:[%s981_s2 + $0x18] sm:$0xff] }
  0xb2   :  { %v832_v47 = vpop.eup %606  ;;  %v256_v48 = vsub.f32 1.0, %v255_v40  ;;  %v351_v30 = vmul.f32 %v827_v42, %v252_v18  ;;  %v237_v31 = vsel %vm234_vm0, %v236_v25, %v232_v2  ;;  %vm324_vm2 = vweird.f32 %v817_v32  ;;  %v377_v2 = vpop.permute.xlu2 %376 }
  0xb3   :  { %v836_v51 = vpop.eup %608  ;;  %v290_v6 = vmul.f32 %v832_v47, %v806_v22  ;;  %vm295_vm1 = vweird.f32 %v832_v47  ;;  %v328_v40 = vand.u32 2147483647, %v817_v32  ;;  %v330_v41 = vand.u32 2147483648, %v817_v32 }
  0xb4   :  { %v611_v54 = vpop.eup %610  ;;  %v257_v58 = vmul.f32 %v601_v34, %v256_v48  ;;  %v305_v11 = vmul.f32 %v836_v51, %v810_v24  ;;  %vm309_vm6 = vweird.f32 %v810_v24  ;;  %vm310_vm7 = vweird.f32 %v836_v51 }
  0xb5   :  { %v844_v59 = vpop.eup %612  ;;  %v847_v61 = vadd.f32 1.0, %v611_v54  ;;  %v291_v20 = vsub.f32 1.0, %v290_v6  ;;  %v313_v45 = vand.u32 2147483647, %v810_v24  ;;  %v331_v50 = vor.u32 1.1754944e-38, %v330_v41 }
  0xb6   :  { %v258_v0 = vadd.f32 %v601_v34, %v257_v58  ;;  %v320_v1 = vmul.f32 %v844_v59, %v817_v32  ;;  %v615_v17 = vpop.eup %614  ;;  %v306_v26 = vsub.f32 1.0, %v305_v11  ;;  %vm325_vm3 = vweird.f32 %v844_v59  ;;  %v363_v11 = vld [vmem:[%s981_s2 + $0x10] sm:$0xff] }
  0xb7   :  { %618 = vrcp.f32 %v847_v61  ;;  %v617_v23 = vpop.eup %616  ;;  %v349_v21 = vmul.f32 %v615_v17, %v222_v28  ;;  %v292_v35 = vmul.f32 %v832_v47, %v291_v20  ;;  %v345_v39 = vand.u32 2147483648, %v847_v61  ;;  %vm908_vm5 = vmor %vm324_vm2, %vm325_vm3  ;;  %v435_v28 = vld [vmem:[%s981_s2 + $0x20] sm:$0xff] }
  0xb8   :  { %v262_v9 = vsel %vm859_vm9, %v601_v34, %v258_v0  ;;  %v321_v10 = vsub.f32 1.0, %v320_v1  ;;  %v350_v34 = vmul.f32 %v617_v23, %v237_v31  ;;  %v343_v43 = vand.u32 2147483647, %v847_v61  ;;  %v372_v23 = vpop.permute.xlu0 %371  ;;  %v437_v31 = vld [vmem:[%s981_s2 + $0x30] sm:$0xff] }
  0xb9   :  { %v267_v55 = vsel %vm264_vm12, %v266_v5, %v262_v9  ;;  %vm339_vm8 = vweird.f32 %v847_v61  ;;  %v346_v49 = vor.u32 1.1754944e-38, %v345_v39  ;;  %v315_v52 = vand.u32 2147483648, %v810_v24  ;;  %vm926_vm12 = vmor %vm309_vm6, %vm310_vm7 }
  0xba   :  { %v322_v7 = vmul.f32 %v844_v59, %v321_v10  ;;  %v352_v29 = vmul.f32 %v821_v37, %v267_v55  ;;  %v307_v37 = vmul.f32 %v836_v51, %v306_v26  ;;  %vm344_vm10 = vcmp.eq.f32.partialorder %v343_v43, 8.507059e+37  ;;  %v382_v55 = vpop.permute.xlu1 %381 }
  0xbb   :  { %vm329_vm11 = vcmp.eq.f32.partialorder %v328_v40, 8.507059e+37  ;;  %v293_v54 = vadd.f32 %v832_v47, %v292_v35  ;;  %vm294_vm13 = vweird.f32 %v806_v22  ;;  %v298_v0 = vand.u32 2147483647, %v806_v22  ;;  %v361_v22 = vld [vmem:[%s981_s2] sm:$0xff] }
  0xbc   :  { %v323_v38 = vadd.f32 %v844_v59, %v322_v7  ;;  %620 = vtanh.f32 %v352_v29  ;;  %v308_v48 = vadd.f32 %v836_v51, %v307_v37  ;;  %v316_v3 = vor.u32 1.1754944e-38, %v315_v52  ;;  %vm296_vm14 = vmor %vm294_vm13, %vm295_vm1 }
  0xbd   :  { %v619_v27 = vpop.eup %618  ;;  %622 = vtanh.f32 %v351_v30  ;;  %vm314_vm15 = vcmp.eq.f32.partialorder %v313_v45, 8.507059e+37  ;;  %v297_v4 = vsel %vm296_vm14, %v832_v47, %v293_v54  ;;  %v301_v8 = vor.u32 1.1754944e-38, %v300_v60  ;;  %v362_v47 = vld [vmem:[%s981_s2 + $0x8] sm:$0xff] }
  0xbe   :  { %v335_v33 = vmul.f32 %v619_v27, %v847_v61  ;;  %vm340_vm4 = vweird.f32 %v619_v27  ;;  %624 = vtanh.f32 %v350_v34  ;;  %v327_v32 = vsel %vm908_vm5, %v844_v59, %v323_v38  ;;  %v436_v30 = vld [vmem:[%s981_s2 + $0x28] sm:$0xff]  ;;  %v456_v38 = vpop.permute.xlu2 %455 }
  0xbf   :  { %vm341_vm9 = vmor %vm339_vm8, %vm340_vm4  ;;  %626 = vtanh.f32 %v349_v21  ;;  %v332_v58 = vsel %vm329_vm11, %v331_v50, %v327_v32  ;;  %v312_v63 = vsel %vm926_vm12, %v836_v51, %v308_v48  ;;  %vm299_vm0 = vcmp.eq.f32.partialorder %v298_v0, 8.507059e+37  ;;  %v508_v48 = vld [vmem:[%s981_s2 + $0x40] sm:$0xff] }
  0xc0   :  { %v336_v36 = vsub.f32 1.0, %v335_v33  ;;  %v317_v6 = vsel %vm314_vm15, %v316_v3, %v312_v63  ;;  %v302_v51 = vsel %vm299_vm0, %v301_v8, %v297_v4  ;;  %vm389_vm2 = vcmask 261120   ;;  %v438_v33 = vld [vmem:[%s981_s2 + $0x38] sm:$0xff]  ;;  %v451_v41 = vpop.permute.xlu0 %450 }
  0xc2   :  { %v337_v42 = vmul.f32 %v619_v27, %v336_v36  ;;  %v621_v56 = vpop.eup %620  ;;  %v461_v36 = vpop.permute.xlu1 %460 }
  0xc3   :  { %v623_v61 = vpop.eup %622 }
  0xc4   :  { %v338_v46 = vadd.f32 %v619_v27, %v337_v42  ;;  %v625_v1 = vpop.eup %624  ;;  %v359_v24 = vmul.f32 %v623_v61, %v332_v58 }
  0xc5   :  { %v627_v5 = vpop.eup %626  ;;  %v358_v9 = vmul.f32 %v625_v1, %v317_v6 }
  0xc6   :  { %v342_v53 = vsel %vm341_vm9, %v619_v27, %v338_v46  ;;  %v357_v10 = vmul.f32 %v627_v5, %v302_v51  ;;  %v513_v50 = vpop.permute.xlu2 %512 }
  0xc7   :  { %v347_v57 = vsel %vm344_vm10, %v346_v49, %v342_v53 }
  0xc8   :  { %v360_v62 = vmul.f32 %v621_v56, %v347_v57 }
  0xca   :  { %414 = vmatpush.msrb.mxu1 %v360_v62  ;;  %v446_v43 = vpop.permute.xlu1 %445 }
  0xcc   :  { %415 = vmatpush.msrb.mxu1 %v359_v24 }
  0xce   :  { %416 = vmatpush.msrb.mxu1 %v358_v9 }
  0xd0   :  { %417 = vmatpush.msrb.mxu1 %v357_v10 }
  0xd1   :  { %563 = vmatmul.msk.f32.vlgmr.msrb.gmra.mxu1 %vm389_vm2, %v361_v22 }
  0xd9   :  { %564 = vmatmul.msk.f32.gmra.mxu1 %vm389_vm2, %v362_v47 }
  0xe1   :  { %565 = vmatmul.msk.f32.gmra.mxu1 %vm389_vm2, %v363_v11 }
  0xe9   :  { %566 = vmatmul.msk.f32.gmra.mxu1 %vm389_vm2, %v364_v12 }
 0x14e   :  { %v419_v13 = vpop.f32.mrf.mxu1 }
 0x14f   :  { %v420_v25 = vadd.f32 %v419_v13, %v372_v23 }
 0x156   :  { %v422_v14 = vpop.f32.mrf.mxu1 }
 0x157   :  { %v423_v20 = vadd.f32 %v422_v14, %v377_v2 }
 0x15e   :  { %v425_v15 = vpop.f32.mrf.mxu1 }
 0x15f   :  { %v426_v18 = vadd.f32 %v425_v15, %v382_v55 }
 0x166   :  { %v428_v17 = vpop.f32.mrf.mxu1 }
 0x167   :  { %v429_v19 = vadd.f32 %v428_v17, %v387_v16 }
 0x169   :  { %628 = vtanh.f32 %v429_v19 }
 0x16a   :  { %630 = vtanh.f32 %v426_v18 }
 0x16b   :  { %632 = vtanh.f32 %v423_v20 }
 0x16c   :  { %634 = vtanh.f32 %v420_v25 }
 0x16f   :  { %v629_v7 = vpop.eup %628 }
 0x170   :  { %487 = vmatpush.msra.mxu2 %v629_v7  ;;  %v631_v26 = vpop.eup %630 }
 0x171   :  { %v633_v27 = vpop.eup %632 }
 0x172   :  { %488 = vmatpush.msra.mxu2 %v631_v26  ;;  %v635_v29 = vpop.eup %634 }
 0x174   :  { %489 = vmatpush.msra.mxu2 %v633_v27 }
 0x176   :  { %490 = vmatpush.msra.mxu2 %v635_v29 }
 0x177   :  { %567 = vmatmul.msk.f32.vlgmr.msra.gmra.mxu2 %vm389_vm2, %v435_v28 }
 0x17f   :  { %568 = vmatmul.msk.f32.gmra.mxu2 %vm389_vm2, %v436_v30 }
 0x187   :  { %569 = vmatmul.msk.f32.gmra.mxu2 %vm389_vm2, %v437_v31 }
 0x18f   :  { %570 = vmatmul.msk.f32.gmra.mxu2 %vm389_vm2, %v438_v33 }
 0x1fa   :  { %v492_v21 = vpop.f32.mrf.mxu2 }
 0x1fb   :  { %v493_v44 = vadd.f32 %v492_v21, %v446_v43 }
 0x202   :  { %v495_v34 = vpop.f32.mrf.mxu2 }
 0x203   :  { %v496_v42 = vadd.f32 %v495_v34, %v451_v41 }
 0x20a   :  { %v498_v35 = vpop.f32.mrf.mxu2 }
 0x20b   :  { %v499_v39 = vadd.f32 %v498_v35, %v456_v38 }
 0x212   :  { %v501_v37 = vpop.f32.mrf.mxu2 }
 0x213   :  { %v502_v40 = vadd.f32 %v501_v37, %v461_v36 }
 0x215   :  { %636 = vtanh.f32 %v502_v40 }
 0x216   :  { %638 = vtanh.f32 %v499_v39 }
 0x217   :  { %640 = vtanh.f32 %v496_v42 }
 0x218   :  { %642 = vtanh.f32 %v493_v44 }
 0x21b   :  { %v637_v45 = vpop.eup %636 }
 0x21c   :  { %530 = vmatpush.msrb.mxu3 %v637_v45  ;;  %v639_v46 = vpop.eup %638 }
 0x21d   :  { %v641_v32 = vpop.eup %640 }
 0x21e   :  { %531 = vmatpush.msrb.mxu3 %v639_v46  ;;  %v643_v49 = vpop.eup %642 }
 0x220   :  { %532 = vmatpush.msrb.mxu3 %v641_v32 }
 0x222   :  { %533 = vmatpush.msrb.mxu3 %v643_v49 }
 0x223   :  { %571 = vmatmul.msk.f32.vlgmr.msrb.gmra.mxu3 %vm389_vm2, %v508_v48 }
 0x2a6   :  { %v535_v52 = vpop.f32.mrf.mxu3 }
 0x2a7   :  { %v536_v53 = vadd.f32 %v535_v52, %v513_v50 }
 0x2a9   :  { %538 = vst [vmem:[%s982_s4] sm:$0x1] %v536_v53 }

</bundles_post_ra>
